<compile_context>
chip_gen: v7x
topology: tpu7x:2x2x1
jax: 0.10.0
libtpu: 0.0.40
codegen_flags: <defaults>
</compile_context>

<pallas_src>
import functools

import jax
import jax.numpy as jnp
from jax import lax
from jax.experimental import pallas as pl
from jax.experimental.pallas import tpu as pltpu


def _round_up(x, m):
    return ((x + m - 1) // m) * m


def _embed_kernel(labels_ref, table_ref, out_ref, *, tb):
    # labels_ref: SMEM scalar-prefetch ref, shape (B_pad,); token-drop already
    #             folded in and values clamped to valid row indices.
    # table_ref:  (V, H) embedding table, resident in VMEM (constant index_map
    #             => one HBM->VMEM DMA, reused across the whole grid).
    # out_ref:    (tb, H) sublane/lane-dense output tile for this batch tile.
    base = pl.program_id(0) * tb

    def body(i, carry):
        lbl = labels_ref[base + i]
        out_ref[pl.ds(i, 1), :] = table_ref[pl.ds(lbl, 1), :]
        return carry

    lax.fori_loop(0, tb, body, 0, unroll=True)


def label_embedder_forward(labels, table, *, num_classes, dropout_prob,
                           train, rng=None, force_drop_ids=None, tb=None):
    """Forward pass of LabelEmbedder.

    labels: (B,) int   table: (num_classes + use_cfg, H)
    returns: (B, 1, H) -- matches torch `self.embedding_table(labels).unsqueeze(1)`.
    """
    B = labels.shape[0]
    V, H = table.shape
    labels = labels.astype(jnp.int32)

    # token_drop (classifier-free guidance), folded into the labels here so the
    # kernel only needs one scalar-prefetch array.
    use_dropout = dropout_prob > 0
    if (train and use_dropout) or (force_drop_ids is not None):
        if force_drop_ids is None:
            if rng is None:
                raise ValueError(
                    "rng is required when train=True, dropout_prob>0 and "
                    "force_drop_ids is None")
            drop_ids = jax.random.uniform(rng, (B,)) < dropout_prob
        else:
            drop_ids = force_drop_ids == 1
        labels = jnp.where(drop_ids, jnp.int32(num_classes), labels)

    # Safety clamp: out-of-range labels would otherwise index outside the table.
    labels = jnp.clip(labels, 0, V - 1)

    # Batch tile: multiple of 8 (sublane-dense output tile), capped at 64.
    if tb is None:
        tb = min(64, _round_up(max(B, 1), 8))
    b_pad = _round_up(B, tb)
    labels_padded = jnp.zeros((b_pad,), jnp.int32).at[:B].set(labels)

    grid_spec = pltpu.PrefetchScalarGridSpec(
        num_scalar_prefetch=1,               # labels -> SMEM
        grid=(b_pad // tb,),
        in_specs=[
            # Whole table resident in VMEM; constant block index => DMA once.
            pl.BlockSpec((V, H), lambda b, labels_ref: (0, 0)),
        ],
        out_specs=pl.BlockSpec((tb, H), lambda b, labels_ref: (b, 0)),
    )

    dtype_bytes = jnp.dtype(table.dtype).itemsize
    cost = pl.CostEstimate(
        flops=0,
        transcendentals=0,
        bytes_accessed=int(V * H * dtype_bytes
                           + b_pad * H * dtype_bytes
                           + b_pad * 4),
    )

    out = pl.pallas_call(
        functools.partial(_embed_kernel, tb=tb),
        out_shape=jax.ShapeDtypeStruct((b_pad, H), table.dtype),
        grid_spec=grid_spec,
        compiler_params=pltpu.CompilerParams(
            dimension_semantics=("parallel",)),
        cost_estimate=cost,
    )(labels_padded, table)

    # Metadata-only: drop batch padding and add the torch `.unsqueeze(1)` dim.
    return out[:B][:, None, :]


if __name__ == "__main__":
    key = jax.random.PRNGKey(0)
    k_table, k_labels, k_drop, k_rng = jax.random.split(key, 4)

    num_classes = 10
    hidden_size = 128
    dropout_prob = 0.1
    batch = 8

    # nn.Embedding(num_classes + 1, hidden_size) -- deterministic synthetic init.
    table = 0.02 * jax.random.normal(
        k_table, (num_classes + 1, hidden_size), dtype=jnp.float32)
    labels = jax.random.randint(k_labels, (batch,), 0, num_classes, jnp.int32)
    force_drop_ids = (jax.random.uniform(k_drop, (batch,)) < 0.5).astype(jnp.int32)

    # 1) train=True with explicit force_drop_ids (deterministic CFG drop).
    out = label_embedder_forward(
        labels, table, num_classes=num_classes, dropout_prob=dropout_prob,
        train=True, force_drop_ids=force_drop_ids)
    out = jax.block_until_ready(out)

    dropped = jnp.where(force_drop_ids == 1, num_classes, labels)
    ref = jnp.take(table, dropped, axis=0)[:, None, :]
    assert out.shape == (batch, 1, hidden_size), out.shape
    assert jnp.allclose(out, ref), "train/force_drop path mismatch"

    # 2) eval path (no dropout applied).
    out_eval = jax.block_until_ready(
        label_embedder_forward(labels, table, num_classes=num_classes,
                               dropout_prob=dropout_prob, train=False))
    ref_eval = jnp.take(table, labels, axis=0)[:, None, :]
    assert jnp.allclose(out_eval, ref_eval), "eval path mismatch"

    # 3) ragged batch (exercises batch padding + slicing), eval path.
    batch2 = 5
    labels2 = jax.random.randint(k_rng, (batch2,), 0, num_classes, jnp.int32)
    out2 = jax.block_until_ready(
        label_embedder_forward(labels2, table, num_classes=num_classes,
                               dropout_prob=dropout_prob, train=False))
    ref2 = jnp.take(table, labels2, axis=0)[:, None, :]
    assert out2.shape == (batch2, 1, hidden_size), out2.shape
    assert jnp.allclose(out2, ref2), "ragged-batch path mismatch"

    # 4) train=True with rng-driven dropout (just exercise the path; result
    #    must be a valid row of the table for every batch element).
    out_rng = jax.block_until_ready(
        label_embedder_forward(labels, table, num_classes=num_classes,
                               dropout_prob=dropout_prob, train=True,
                               rng=k_rng))
    matches = (out_rng[:, 0, None, :] == table[None, :, :]).all(-1).any(-1)
    assert bool(matches.all()), "rng-dropout path produced non-table rows"

    print("KERNEL_OK")
</pallas_src>

<mosaic_0001>
module attributes {stable_mosaic.version = 11 : i64} {
  func.func @_embed_kernel(%arg0: i32, %arg1: memref<8xi32, #tpu.memory_space<smem>>, %arg2: memref<11x128xf32, #tpu.memory_space<vmem>>, %arg3: memref<8x128xf32, #tpu.memory_space<vmem>>) attributes {dimension_semantics = [#tpu.dimension_semantics<parallel>], iteration_bounds = array<i64: 1>, scalar_prefetch = 1 : i64, scratch_operands = 0 : i64, tpu.core_type = #tpu.core_type<tc>, window_params = [{pipeline_mode = #tpu.pipeline_mode<synchronous>, transform_indices = @transform_0, window_bounds = array<i64: 11, 128>}, {transform_indices = @transform_1, window_bounds = array<i64: 8, 128>}]} {
    %c8_i32 = arith.constant 8 : i32
    %0 = arith.muli %arg0, %c8_i32 : i32
    %c0_i32 = arith.constant 0 : i32
    %1 = arith.addi %0, %c0_i32 : i32
    %2 = arith.index_cast %1 : i32 to index
    %3 = memref.load %arg1[%2] : memref<8xi32, #tpu.memory_space<smem>>
    %4 = arith.index_cast %3 : i32 to index
    %c0 = arith.constant 0 : index
    %5 = vector.load %arg2[%4, %c0] : memref<11x128xf32, #tpu.memory_space<vmem>>, vector<1x128xf32>
    %6 = arith.index_cast %c0_i32 : i32 to index
    %c0_0 = arith.constant 0 : index
    %7 = vector.load %arg3[%6, %c0_0] : memref<8x128xf32, #tpu.memory_space<vmem>>, vector<1x128xf32>
    tpu.vector_store %arg3[%6, %c0_0], %5 {strides = array<i32>} : memref<8x128xf32, #tpu.memory_space<vmem>>, vector<1x128xf32>,
    %c1_i32 = arith.constant 1 : i32
    %8 = arith.addi %0, %c1_i32 : i32
    %9 = arith.index_cast %8 : i32 to index
    %10 = memref.load %arg1[%9] : memref<8xi32, #tpu.memory_space<smem>>
    %11 = arith.index_cast %10 : i32 to index
    %c0_1 = arith.constant 0 : index
    %12 = vector.load %arg2[%11, %c0_1] : memref<11x128xf32, #tpu.memory_space<vmem>>, vector<1x128xf32>
    %13 = arith.index_cast %c1_i32 : i32 to index
    %c0_2 = arith.constant 0 : index
    %14 = vector.load %arg3[%13, %c0_2] : memref<8x128xf32, #tpu.memory_space<vmem>>, vector<1x128xf32>
    tpu.vector_store %arg3[%13, %c0_2], %12 {strides = array<i32>} : memref<8x128xf32, #tpu.memory_space<vmem>>, vector<1x128xf32>,
    %c2_i32 = arith.constant 2 : i32
    %15 = arith.addi %0, %c2_i32 : i32
    %16 = arith.index_cast %15 : i32 to index
    %17 = memref.load %arg1[%16] : memref<8xi32, #tpu.memory_space<smem>>
    %18 = arith.index_cast %17 : i32 to index
    %c0_3 = arith.constant 0 : index
    %19 = vector.load %arg2[%18, %c0_3] : memref<11x128xf32, #tpu.memory_space<vmem>>, vector<1x128xf32>
    %20 = arith.index_cast %c2_i32 : i32 to index
    %c0_4 = arith.constant 0 : index
    %21 = vector.load %arg3[%20, %c0_4] : memref<8x128xf32, #tpu.memory_space<vmem>>, vector<1x128xf32>
    tpu.vector_store %arg3[%20, %c0_4], %19 {strides = array<i32>} : memref<8x128xf32, #tpu.memory_space<vmem>>, vector<1x128xf32>,
    %c3_i32 = arith.constant 3 : i32
    %22 = arith.addi %0, %c3_i32 : i32
    %23 = arith.index_cast %22 : i32 to index
    %24 = memref.load %arg1[%23] : memref<8xi32, #tpu.memory_space<smem>>
    %25 = arith.index_cast %24 : i32 to index
    %c0_5 = arith.constant 0 : index
    %26 = vector.load %arg2[%25, %c0_5] : memref<11x128xf32, #tpu.memory_space<vmem>>, vector<1x128xf32>
    %27 = arith.index_cast %c3_i32 : i32 to index
    %c0_6 = arith.constant 0 : index
    %28 = vector.load %arg3[%27, %c0_6] : memref<8x128xf32, #tpu.memory_space<vmem>>, vector<1x128xf32>
    tpu.vector_store %arg3[%27, %c0_6], %26 {strides = array<i32>} : memref<8x128xf32, #tpu.memory_space<vmem>>, vector<1x128xf32>,
    %c4_i32 = arith.constant 4 : i32
    %29 = arith.addi %0, %c4_i32 : i32
    %30 = arith.index_cast %29 : i32 to index
    %31 = memref.load %arg1[%30] : memref<8xi32, #tpu.memory_space<smem>>
    %32 = arith.index_cast %31 : i32 to index
    %c0_7 = arith.constant 0 : index
    %33 = vector.load %arg2[%32, %c0_7] : memref<11x128xf32, #tpu.memory_space<vmem>>, vector<1x128xf32>
    %34 = arith.index_cast %c4_i32 : i32 to index
    %c0_8 = arith.constant 0 : index
    %35 = vector.load %arg3[%34, %c0_8] : memref<8x128xf32, #tpu.memory_space<vmem>>, vector<1x128xf32>
    tpu.vector_store %arg3[%34, %c0_8], %33 {strides = array<i32>} : memref<8x128xf32, #tpu.memory_space<vmem>>, vector<1x128xf32>,
    %c5_i32 = arith.constant 5 : i32
    %36 = arith.addi %0, %c5_i32 : i32
    %37 = arith.index_cast %36 : i32 to index
    %38 = memref.load %arg1[%37] : memref<8xi32, #tpu.memory_space<smem>>
    %39 = arith.index_cast %38 : i32 to index
    %c0_9 = arith.constant 0 : index
    %40 = vector.load %arg2[%39, %c0_9] : memref<11x128xf32, #tpu.memory_space<vmem>>, vector<1x128xf32>
    %41 = arith.index_cast %c5_i32 : i32 to index
    %c0_10 = arith.constant 0 : index
    %42 = vector.load %arg3[%41, %c0_10] : memref<8x128xf32, #tpu.memory_space<vmem>>, vector<1x128xf32>
    tpu.vector_store %arg3[%41, %c0_10], %40 {strides = array<i32>} : memref<8x128xf32, #tpu.memory_space<vmem>>, vector<1x128xf32>,
    %c6_i32 = arith.constant 6 : i32
    %43 = arith.addi %0, %c6_i32 : i32
    %44 = arith.index_cast %43 : i32 to index
    %45 = memref.load %arg1[%44] : memref<8xi32, #tpu.memory_space<smem>>
    %46 = arith.index_cast %45 : i32 to index
    %c0_11 = arith.constant 0 : index
    %47 = vector.load %arg2[%46, %c0_11] : memref<11x128xf32, #tpu.memory_space<vmem>>, vector<1x128xf32>
    %48 = arith.index_cast %c6_i32 : i32 to index
    %c0_12 = arith.constant 0 : index
    %49 = vector.load %arg3[%48, %c0_12] : memref<8x128xf32, #tpu.memory_space<vmem>>, vector<1x128xf32>
    tpu.vector_store %arg3[%48, %c0_12], %47 {strides = array<i32>} : memref<8x128xf32, #tpu.memory_space<vmem>>, vector<1x128xf32>,
    %c7_i32 = arith.constant 7 : i32
    %50 = arith.addi %0, %c7_i32 : i32
    %51 = arith.index_cast %50 : i32 to index
    %52 = memref.load %arg1[%51] : memref<8xi32, #tpu.memory_space<smem>>
    %53 = arith.index_cast %52 : i32 to index
    %c0_13 = arith.constant 0 : index
    %54 = vector.load %arg2[%53, %c0_13] : memref<11x128xf32, #tpu.memory_space<vmem>>, vector<1x128xf32>
    %55 = arith.index_cast %c7_i32 : i32 to index
    %c0_14 = arith.constant 0 : index
    %56 = vector.load %arg3[%55, %c0_14] : memref<8x128xf32, #tpu.memory_space<vmem>>, vector<1x128xf32>
    tpu.vector_store %arg3[%55, %c0_14], %54 {strides = array<i32>} : memref<8x128xf32, #tpu.memory_space<vmem>>, vector<1x128xf32>,
    %c8_i32_15 = arith.constant 8 : i32
    return
  }
  func.func @transform_0(%arg0: i32, %arg1: memref<8xi32, #tpu.memory_space<smem>>) -> (i32, i32) {
    %c0_i32 = arith.constant 0 : i32
    %c0_i32_0 = arith.constant 0 : i32
    %c0_i32_1 = arith.constant 0 : i32
    return %c0_i32, %c0_i32_0 : i32, i32
  }
  func.func @transform_1(%arg0: i32, %arg1: memref<8xi32, #tpu.memory_space<smem>>) -> (i32, i32) {
    %c0_i32 = arith.constant 0 : i32
    %c0_i32_0 = arith.constant 0 : i32
    return %arg0, %c0_i32 : i32, i32
  }
}

</mosaic_0001>

<bundles_post_ra>
// kernel: tpu_custom_call.1
= control target key start
LH: loop header
LB: loop body
LE: loop exit
PB: predicated region body
PF: predicated region fallthrough
CT: control target
= control target key end

     0   :  { %s226_s0 = inlined_call_operand.hbm [shape: s32[8], index: 0, kind: input, shape index: {}]   ;;  %s227_s1 = inlined_call_operand.hbm [shape: f32[11,128], index: 1, kind: input, shape index: {}]   ;;  %s228_s2 = inlined_call_operand.hbm [shape: f32[8,128], index: 2, kind: output, shape index: {}]  }
   0x1   :  { %s103_s11 = scalar_lea.hbm %s226_s0, 16 }
   0x2   :  { %p104_p0 = scmp.ne.s32.totalorder %s226_s0, %s103_s11  ;;  %p107_p1 = scmp.lt.u32.totalorder %s103_s11, %s226_s0 }
   0x4   :  { %p109_p2 = pnand %p107_p1, %p104_p0 }
   0x6   :  { %112 = shalt.err (!%p109_p2)  }
   0x7   :  { %s163_s16 = smov [#allocation3]  }
   0x8   :  { %8 = dma.hbm_to_smem %s226_s0, 16, %s163_s16, [#allocation2] }
   0x9   :  { %157 = dma.done.wait [#allocation2], 16 }
   0xa   :  { %158 = vsyncadd [#allocation2], 4294967280 }
   0xb   :  { %10 = sfence }
   0xc   :  { %11 = vsyncpa [#allocation5], 0 }
   0xd   :  { %12 = vsyncpa [#allocation6], 0  ;;  %s164_s19 = smov [#allocation4]   ;;  %s113_s23 = scalar_lea.hbm %s227_s1, 256 }
   0xe   :  { %s18_s20 = sshll.u32 %s164_s19, 4  ;;  %p114_p3 = scmp.ne.s32.totalorder %s227_s1, %s113_s23  ;;  %s19_s20 = int_to_ptr.vmem [resolvable:$true] %s18_s20 }
   0xf   :  { %p117_p4 = scmp.lt.u32.totalorder %s113_s23, %s227_s1 }
  0x11   :  { %p119_p5 = pnand %p117_p4, %p114_p3 }
  0x13   :  { %122 = shalt.err (!%p119_p5)
}
  0x14   :  { %s123_s0 = scalar_lea.vmem %s19_s20, 256  ;;  %p128_p7 = scmp.lt.s32.totalorder %s19_s20, %s19_s20 }
  0x15   :  { %p124_p6 = scmp.ne.s32.totalorder %s19_s20, %s123_s0  ;;  %p129_p8 = scmp.lt.s32.totalorder %s123_s0, %s123_s0 }
  0x17   :  { %p130_p9 = por %p129_p8, %p128_p7 }
  0x19   :  { %p131_p10 = pnand %p130_p9, %p124_p6 }
  0x1b   :  { %134 = shalt.err (!%p131_p10)
}
  0x1c   :  { %s165_s28 = smov 128   ;;  %s166_s29 = smov 8  }
  0x1d   :  { %24 = dma.hbm_to_vmem [thread:$0]  %s227_s1, 256, %s19_s20, [#allocation5], %s165_s28, %s165_s28, %s166_s29  }
  0x1e   :  { %159 = dma.done.wait [#allocation5], 256  }
  0x1f   :  { %160 = vsyncadd [#allocation5], 4294967040  ;;  %s29_s4 = sld [smem:[#allocation3]]  ;;  %s91_s5 = sld [smem:[#allocation3 + $0x1]] }
  0x20   :  { %s92_s6 = sld [smem:[#allocation3 + $0x2]]  ;;  %s93_s7 = sld [smem:[#allocation3 + $0x3]] }
  0x21   :  { %s94_s8 = sld [smem:[#allocation3 + $0x4]]  ;;  %s95_s9 = sld [smem:[#allocation3 + $0x5]] }
  0x22   :  { %s96_s10 = sld [smem:[#allocation3 + $0x6]]  ;;  %s97_s11 = sld [smem:[#allocation3 + $0x7]] }
  0x23   :  { %s167_s12 = smov [#allocation7]  }
  0x24   :  { %s74_s13 = sshll.u32 %s167_s12, 4  ;;  %s207_s13 = int_to_ptr.vmem [resolvable:$true] %s74_s13 }
  0x25   :  { %s30_s14 = scalar_lea.vmem [#allocation4], %s29_s4  ;;  %s35_s15 = scalar_lea.vmem [#allocation4], %s91_s5 }
  0x26   :  { %v31_v0 = vld [vmem:[%s30_s14] sm:$0x1]  ;;  %s40_s1 = scalar_lea.vmem [#allocation4], %s92_s6  ;;  %s45_s16 = scalar_lea.vmem [#allocation4], %s93_s7 }
  0x27   :  { %v36_v1 = vld [vmem:[%s35_s15] sm:$0x1]  ;;  %32 = vst [vmem:[#allocation7] sm:$0x1] %v31_v0  ;;  %s50_s17 = scalar_lea.vmem [#allocation4], %s94_s8  ;;  %s55_s18 = scalar_lea.vmem [#allocation4], %s95_s9 }
  0x28   :  { %37 = vst [vmem:[#allocation7 + $0x1] sm:$0x1] %v36_v1  ;;  %v41_v2 = vld [vmem:[%s40_s1] sm:$0x1]  ;;  %s60_s19 = scalar_lea.vmem [#allocation4], %s96_s10  ;;  %s65_s20 = scalar_lea.vmem [#allocation4], %s97_s11 }
  0x29   :  { %v46_v3 = vld [vmem:[%s45_s16] sm:$0x1]  ;;  %42 = vst [vmem:[#allocation7 + $0x2] sm:$0x1] %v41_v2  ;;  %s135_s21 = scalar_lea.vmem %s207_s13, 128  ;;  %p140_p12 = scmp.lt.s32.totalorder %s207_s13, %s207_s13 }
  0x2a   :  { %47 = vst [vmem:[#allocation7 + $0x3] sm:$0x1] %v46_v3  ;;  %v51_v4 = vld [vmem:[%s50_s17] sm:$0x1]  ;;  %p136_p11 = scmp.ne.s32.totalorder %s207_s13, %s135_s21  ;;  %p141_p13 = scmp.lt.s32.totalorder %s135_s21, %s135_s21 }
  0x2b   :  { %v56_v5 = vld [vmem:[%s55_s18] sm:$0x1]  ;;  %52 = vst [vmem:[#allocation7 + $0x4] sm:$0x1] %v51_v4 }
  0x2c   :  { %57 = vst [vmem:[#allocation7 + $0x5] sm:$0x1] %v56_v5  ;;  %v61_v6 = vld [vmem:[%s60_s19] sm:$0x1]  ;;  %p142_p0 = por %p141_p13, %p140_p12 }
  0x2d   :  { %v66_v7 = vld [vmem:[%s65_s20] sm:$0x1]  ;;  %62 = vst [vmem:[#allocation7 + $0x6] sm:$0x1] %v61_v6 }
  0x2e   :  { %67 = vst [vmem:[#allocation7 + $0x7] sm:$0x1] %v66_v7  ;;  %p143_p1 = pnand %p142_p0, %p136_p11 }
  0x30   :  { %146 = shalt.err (!%p143_p1)
}
  0x31   :  { %s147_s24 = scalar_lea.hbm %s228_s2, 128 }
  0x32   :  { %p148_p2 = scmp.ne.s32.totalorder %s228_s2, %s147_s24  ;;  %p151_p3 = scmp.lt.u32.totalorder %s147_s24, %s228_s2 }
  0x34   :  { %p153_p4 = pnand %p151_p3, %p148_p2 }
  0x36   :  { %156 = shalt.err (!%p153_p4)
}
  0x37   :  { %77 = dma.vmem_to_hbm [thread:$0]  %s207_s13, 128, %s228_s2, [#allocation6]  }
  0x38   :  { %161 = dma.done.wait [#allocation6], 128  }
  0x39   :  { %162 = vsyncadd [#allocation6], 4294967168 }
  0x3a   :  { %81 = vsyncpa [#allocation5], 1 }
  0x3b   :  { %82 = vsyncpa [#allocation6], 1 }

</bundles_post_ra>
